<compile_context>
chip_gen: v6e
topology: v6e:2x2x1
jax: 0.10.0
libtpu: 0.0.40
codegen_flags: <defaults>
</compile_context>

<pallas_src>
import functools

import jax
import jax.numpy as jnp
from jax.experimental import pallas as pl
from jax.experimental.pallas import tpu as pltpu


DEFAULT_BLOCK_M = 256            # rows of the activation per grid step
VMEM_LIMIT = 48 * 1024 * 1024    # safe on v5e/v6e (128 MiB) and v7x (64 MiB)
CLS_PAD = 128                    # lane-dense padding for the 3-way classifier


def _cp(dim_sem=None):
    return pltpu.CompilerParams(dimension_semantics=dim_sem,
                                vmem_limit_bytes=VMEM_LIMIT)


def _tile_m(M, block_m=DEFAULT_BLOCK_M):
    return M if M <= block_m else block_m


# ----------------------------- Pallas kernels ------------------------------

def _linear_kernel(x_ref, w_ref, b_ref, o_ref, *, act):
    x = x_ref[...].astype(jnp.bfloat16)
    w = w_ref[...].astype(jnp.bfloat16)
    y = jnp.dot(x, w, preferred_element_type=jnp.float32) + b_ref[...]
    if act == "tanh":
        y = jnp.tanh(y)
    o_ref[...] = y.astype(o_ref.dtype)


def linear(x, w, b, act="none", block_m=DEFAULT_BLOCK_M):
    """y = x @ w + b (optionally tanh), tiled over the M (rows) dimension."""
    M, K = x.shape
    N = w.shape[1]
    tm = _tile_m(M, block_m)
    return pl.pallas_call(
        functools.partial(_linear_kernel, act=act),
        out_shape=jax.ShapeDtypeStruct((M, N), jnp.float32),
        grid=(pl.cdiv(M, tm),),
        in_specs=[
            pl.BlockSpec((tm, K), lambda i: (i, 0)),
            pl.BlockSpec((K, N), lambda i: (0, 0)),
            pl.BlockSpec((1, N), lambda i: (0, 0)),
        ],
        out_specs=pl.BlockSpec((tm, N), lambda i: (i, 0)),
        compiler_params=_cp(("parallel",)),
    )(x, w, b.reshape(1, N))


def _ln_math(y, g, b, eps):
    mu = jnp.mean(y, axis=-1, keepdims=True)
    var = jnp.mean(jnp.square(y - mu), axis=-1, keepdims=True)
    return (y - mu) * jax.lax.rsqrt(var + eps) * g + b


def _ln_kernel(x_ref, g_ref, b_ref, o_ref, *, eps):
    x = x_ref[...].astype(jnp.float32)
    o_ref[...] = _ln_math(x, g_ref[...], b_ref[...], eps).astype(o_ref.dtype)


def layernorm(x, gamma, beta, eps=1e-12, block_m=DEFAULT_BLOCK_M):
    """Residual-free LayerNorm (used for the embedding LN)."""
    M, H = x.shape
    tm = _tile_m(M, block_m)
    return pl.pallas_call(
        functools.partial(_ln_kernel, eps=eps),
        out_shape=jax.ShapeDtypeStruct((M, H), jnp.float32),
        grid=(pl.cdiv(M, tm),),
        in_specs=[
            pl.BlockSpec((tm, H), lambda i: (i, 0)),
            pl.BlockSpec((1, H), lambda i: (0, 0)),
            pl.BlockSpec((1, H), lambda i: (0, 0)),
        ],
        out_specs=pl.BlockSpec((tm, H), lambda i: (i, 0)),
        compiler_params=_cp(("parallel",)),
    )(x, gamma.reshape(1, H), beta.reshape(1, H))


def _linear_res_ln_kernel(x_ref, w_ref, b_ref, r_ref, g_ref, bb_ref, o_ref, *, eps):
    # fused: LN(x @ w + b + residual)
    x = x_ref[...].astype(jnp.bfloat16)
    w = w_ref[...].astype(jnp.bfloat16)
    y = jnp.dot(x, w, preferred_element_type=jnp.float32)
    y = y + b_ref[...] + r_ref[...].astype(jnp.float32)
    o_ref[...] = _ln_math(y, g_ref[...], bb_ref[...], eps).astype(o_ref.dtype)


def linear_res_ln(x, w, b, res, gamma, beta, eps=1e-12, block_m=DEFAULT_BLOCK_M):
    M, K = x.shape
    H = w.shape[1]
    tm = _tile_m(M, block_m)
    return pl.pallas_call(
        functools.partial(_linear_res_ln_kernel, eps=eps),
        out_shape=jax.ShapeDtypeStruct((M, H), jnp.float32),
        grid=(pl.cdiv(M, tm),),
        in_specs=[
            pl.BlockSpec((tm, K), lambda i: (i, 0)),
            pl.BlockSpec((K, H), lambda i: (0, 0)),
            pl.BlockSpec((1, H), lambda i: (0, 0)),
            pl.BlockSpec((tm, H), lambda i: (i, 0)),
            pl.BlockSpec((1, H), lambda i: (0, 0)),
            pl.BlockSpec((1, H), lambda i: (0, 0)),
        ],
        out_specs=pl.BlockSpec((tm, H), lambda i: (i, 0)),
        compiler_params=_cp(("parallel",)),
    )(x, w, b.reshape(1, H), res, gamma.reshape(1, H), beta.reshape(1, H))


def _ffn_res_ln_kernel(x_ref, w1_ref, b1_ref, w2_ref, b2_ref, g_ref, bb_ref,
                       o_ref, *, eps):
    # fused: LN(gelu(x @ w1 + b1) @ w2 + b2 + x)
    xf = x_ref[...].astype(jnp.float32)
    x = xf.astype(jnp.bfloat16)
    h = jnp.dot(x, w1_ref[...].astype(jnp.bfloat16),
                preferred_element_type=jnp.float32) + b1_ref[...]
    # TODO(synk): HF BERT uses exact erf-GELU; tanh approximation used here.
    h = jax.nn.gelu(h, approximate=True)
    y = jnp.dot(h.astype(jnp.bfloat16), w2_ref[...].astype(jnp.bfloat16),
                preferred_element_type=jnp.float32) + b2_ref[...]
    y = y + xf
    o_ref[...] = _ln_math(y, g_ref[...], bb_ref[...], eps).astype(o_ref.dtype)


def ffn_res_ln(x, w1, b1, w2, b2, gamma, beta, eps=1e-12, block_m=DEFAULT_BLOCK_M):
    M, H = x.shape
    F = w1.shape[1]
    tm = _tile_m(M, block_m)
    return pl.pallas_call(
        functools.partial(_ffn_res_ln_kernel, eps=eps),
        out_shape=jax.ShapeDtypeStruct((M, H), jnp.float32),
        grid=(pl.cdiv(M, tm),),
        in_specs=[
            pl.BlockSpec((tm, H), lambda i: (i, 0)),
            pl.BlockSpec((H, F), lambda i: (0, 0)),
            pl.BlockSpec((1, F), lambda i: (0, 0)),
            pl.BlockSpec((F, H), lambda i: (0, 0)),
            pl.BlockSpec((1, H), lambda i: (0, 0)),
            pl.BlockSpec((1, H), lambda i: (0, 0)),
            pl.BlockSpec((1, H), lambda i: (0, 0)),
        ],
        out_specs=pl.BlockSpec((tm, H), lambda i: (i, 0)),
        compiler_params=_cp(("parallel",)),
    )(x, w1, b1.reshape(1, F), w2, b2.reshape(1, H),
      gamma.reshape(1, H), beta.reshape(1, H))


def _attn_kernel(q_ref, kt_ref, v_ref, m_ref, o_ref, *, scale):
    q = q_ref[0].astype(jnp.bfloat16)       # (NH, S, DH)
    kt = kt_ref[0].astype(jnp.bfloat16)     # (NH, DH, S)  -- K pre-transposed
    v = v_ref[0].astype(jnp.bfloat16)       # (NH, S, DH)
    mask = m_ref[0].astype(jnp.float32)     # (1, S) additive mask
    # scores: batched over heads, no in-kernel K transpose needed
    s = jax.lax.dot_general(q, kt, (((2,), (1,)), ((0,), (0,))),
                            preferred_element_type=jnp.float32)   # (NH, S, S)
    s = s * scale + mask[None, :, :]
    s = s - jnp.max(s, axis=-1, keepdims=True)
    p = jnp.exp(s)
    p = p * pl.reciprocal(jnp.sum(p, axis=-1, keepdims=True), approx=True)
    ctx = jax.lax.dot_general(p.astype(jnp.bfloat16), v,
                              (((2,), (1,)), ((0,), (0,))),
                              preferred_element_type=jnp.float32)  # (NH, S, DH)
    o_ref[0] = ctx.astype(o_ref.dtype)


def attention(q, kt, v, mask3, scale):
    """q,v: (B, NH, S, DH); kt: (B, NH, DH, S); mask3: (B, 1, S) additive."""
    B, NH, S, DH = q.shape
    return pl.pallas_call(
        functools.partial(_attn_kernel, scale=scale),
        out_shape=jax.ShapeDtypeStruct((B, NH, S, DH), jnp.float32),
        grid=(B,),
        in_specs=[
            pl.BlockSpec((1, NH, S, DH), lambda b: (b, 0, 0, 0)),
            pl.BlockSpec((1, NH, DH, S), lambda b: (b, 0, 0, 0)),
            pl.BlockSpec((1, NH, S, DH), lambda b: (b, 0, 0, 0)),
            pl.BlockSpec((1, 1, S), lambda b: (b, 0, 0)),
        ],
        out_specs=pl.BlockSpec((1, NH, S, DH), lambda b: (b, 0, 0, 0)),
        compiler_params=_cp(("parallel",)),
    )(q, kt, v, mask3)


def _cls_ce_kernel(x_ref, w_ref, b_ref, y_ref, logits_ref, loss_ref, *, num_classes):
    x = x_ref[...].astype(jnp.bfloat16)
    w = w_ref[...].astype(jnp.bfloat16)
    logits = jnp.dot(x, w, preferred_element_type=jnp.float32) + b_ref[...]
    B, CP = logits.shape
    col = jax.lax.broadcasted_iota(jnp.int32, (B, CP), 1)
    masked = jnp.where(col < num_classes, logits, -1e30)        # kill pad lanes
    m = jnp.max(masked, axis=-1, keepdims=True)
    lse = m + jnp.log(jnp.sum(jnp.exp(masked - m), axis=-1, keepdims=True))
    nll = lse - jnp.sum(masked * y_ref[...], axis=-1, keepdims=True)   # (B,1)
    logits_ref[...] = logits
    loss_ref[...] = jnp.sum(nll, axis=0, keepdims=True) * (1.0 / B)


def classifier_ce(pooled, w_pad, b_pad, onehot_pad, num_classes):
    B, H = pooled.shape
    CP = w_pad.shape[1]
    logits_pad, loss = pl.pallas_call(
        functools.partial(_cls_ce_kernel, num_classes=num_classes),
        out_shape=(jax.ShapeDtypeStruct((B, CP), jnp.float32),
                   jax.ShapeDtypeStruct((1, 1), jnp.float32)),
        in_specs=[
            pl.BlockSpec((B, H), lambda: (0, 0)),
            pl.BlockSpec((H, CP), lambda: (0, 0)),
            pl.BlockSpec((1, CP), lambda: (0, 0)),
            pl.BlockSpec((B, CP), lambda: (0, 0)),
        ],
        out_specs=(pl.BlockSpec((B, CP), lambda: (0, 0)),
                   pl.BlockSpec((1, 1), lambda: (0, 0))),
        compiler_params=_cp(),
    )(pooled, w_pad, b_pad, onehot_pad)
    return logits_pad[:, :num_classes], loss[0, 0]


# ----------------------------- model wrapper -------------------------------

def bert_layer(x, mask3, lp, B, S, NH, DH, scale):
    H = NH * DH
    # fused QKV projection: (B*S, 3H)
    qkv = linear(x, lp["wqkv"], lp["bqkv"])
    qkv = qkv.reshape(B, S, 3, NH, DH)
    q = qkv[:, :, 0].transpose(0, 2, 1, 3)          # (B, NH, S, DH)
    kt = qkv[:, :, 1].transpose(0, 2, 3, 1)         # (B, NH, DH, S)
    v = qkv[:, :, 2].transpose(0, 2, 1, 3)          # (B, NH, S, DH)

    ctx = attention(q, kt, v, mask3, scale)         # (B, NH, S, DH)
    ctx = ctx.transpose(0, 2, 1, 3).reshape(B * S, H)

    # attention output projection + dropout(identity, eval) + residual + LN
    x = linear_res_ln(ctx, lp["wo"], lp["bo"], x, lp["ln1_g"], lp["ln1_b"])
    # FFN + dropout(identity, eval) + residual + LN (residual = kernel input)
    x = ffn_res_ln(x, lp["w1"], lp["b1"], lp["w2"], lp["b2"],
                   lp["ln2_g"], lp["ln2_b"])
    return x


def mnli_forward(params, input_ids, attention_mask, token_type_ids, labels, cfg):
    B, S = input_ids.shape
    H, NH, C = cfg["hidden"], cfg["heads"], cfg["classes"]
    DH = H // NH
    scale = 1.0 / float(DH) ** 0.5

    # Embeddings (gathers kept in plain-JAX glue)
    emb = (jnp.take(params["word_emb"], input_ids, axis=0)
           + params["pos_emb"][:S][None, :, :]
           + jnp.take(params["type_emb"], token_type_ids, axis=0))
    x = emb.reshape(B * S, H).astype(jnp.float32)
    x = layernorm(x, params["emb_ln_g"], params["emb_ln_b"])

    # Additive attention mask, as in BERT: (1 - mask) * -10000
    mask3 = ((1.0 - attention_mask.astype(jnp.float32)) * -10000.0).reshape(B, 1, S)

    for lp in params["layers"]:
        x = bert_layer(x, mask3, lp, B, S, NH, DH, scale)

    # Pooler: tanh(W * h_[CLS] + b)
    cls_tok = x.reshape(B, S, H)[:, 0, :]
    pooled = linear(cls_tok, params["pool_w"], params["pool_b"], act="tanh")

    # TODO(synk): nn.Dropout applied as identity (eval mode); train-mode drops
    # could use pltpu.prng_random_bits.
    # Classifier + cross-entropy, class axis padded to 128 lanes.
    cls_w_pad = jnp.pad(params["cls_w"], ((0, 0), (0, CLS_PAD - C)))
    cls_b_pad = jnp.pad(params["cls_b"], (0, CLS_PAD - C)).reshape(1, CLS_PAD)
    onehot = jax.nn.one_hot(labels, CLS_PAD, dtype=jnp.float32)
    logits, loss = classifier_ce(pooled, cls_w_pad, cls_b_pad, onehot, C)
    return logits, loss


# ----------------------------- params init ---------------------------------

def init_params(key, cfg):
    H, F, L = cfg["hidden"], cfg["ffn"], cfg["layers"]
    V, P, T, C = cfg["vocab"], cfg["max_pos"], cfg["types"], cfg["classes"]

    keys = iter(jax.random.split(key, 8 + 8 * L))

    def dense(shape, dtype=jnp.bfloat16):
        # weights stored in bf16 (MXU-native, half the HBM traffic)
        return (0.02 * jax.random.normal(next(keys), shape, jnp.float32)).astype(dtype)

    params = {
        "word_emb": dense((V, H), jnp.float32),
        "pos_emb": dense((P, H), jnp.float32),
        "type_emb": dense((T, H), jnp.float32),
        "emb_ln_g": jnp.ones((H,), jnp.float32),
        "emb_ln_b": jnp.zeros((H,), jnp.float32),
        "pool_w": dense((H, H)),
        "pool_b": jnp.zeros((H,), jnp.float32),
        "cls_w": dense((H, C)),
        "cls_b": jnp.zeros((C,), jnp.float32),
        "layers": [],
    }
    for _ in range(L):
        params["layers"].append({
            "wqkv": dense((H, 3 * H)), "bqkv": jnp.zeros((3 * H,), jnp.float32),
            "wo": dense((H, H)), "bo": jnp.zeros((H,), jnp.float32),
            "ln1_g": jnp.ones((H,), jnp.float32),
            "ln1_b": jnp.zeros((H,), jnp.float32),
            "w1": dense((H, F)), "b1": jnp.zeros((F,), jnp.float32),
            "w2": dense((F, H)), "b2": jnp.zeros((H,), jnp.float32),
            "ln2_g": jnp.ones((H,), jnp.float32),
            "ln2_b": jnp.zeros((H,), jnp.float32),
        })
    return params


# --------------------------------- main -------------------------------------

if __name__ == "__main__":
    cfg = dict(hidden=32, heads=4, ffn=64, layers=2,
               vocab=64, max_pos=16, types=2, classes=3)
    B, S = 2, 8

    key = jax.random.PRNGKey(0)
    pkey, ikey, tkey, lkey = jax.random.split(key, 4)

    params = init_params(pkey, cfg)
    input_ids = jax.random.randint(ikey, (B, S), 0, cfg["vocab"], dtype=jnp.int32)
    attention_mask = jnp.array([[1] * S, [1] * (S - 2) + [0] * 2], dtype=jnp.int32)
    token_type_ids = jax.random.randint(tkey, (B, S), 0, cfg["types"], dtype=jnp.int32)
    labels = jax.random.randint(lkey, (B,), 0, cfg["classes"], dtype=jnp.int32)

    logits, loss = mnli_forward(params, input_ids, attention_mask,
                                token_type_ids, labels, cfg)
    jax.block_until_ready((logits, loss))
    print("KERNEL_OK")
</pallas_src>

<mosaic_0001>
module attributes {stable_mosaic.version = 11 : i64} {
  func.func @_ln_kernel(%arg0: i32, %arg1: memref<16x32xf32, #tpu.memory_space<vmem>>, %arg2: memref<1x32xf32, #tpu.memory_space<vmem>>, %arg3: memref<1x32xf32, #tpu.memory_space<vmem>>, %arg4: memref<16x32xf32, #tpu.memory_space<vmem>>) attributes {dimension_semantics = [#tpu.dimension_semantics<parallel>], iteration_bounds = array<i64: 1>, scalar_prefetch = 0 : i64, scratch_operands = 0 : i64, tpu.core_type = #tpu.core_type<tc>, window_params = [{transform_indices = @transform_0, window_bounds = array<i64: 16, 32>}, {pipeline_mode = #tpu.pipeline_mode<synchronous>, transform_indices = @transform_1, window_bounds = array<i64: 1, 32>}, {pipeline_mode = #tpu.pipeline_mode<synchronous>, transform_indices = @transform_2, window_bounds = array<i64: 1, 32>}, {transform_indices = @transform_3, window_bounds = array<i64: 16, 32>}]} {
    %c0 = arith.constant 0 : index
    %c0_0 = arith.constant 0 : index
    %0 = vector.load %arg1[%c0, %c0_0] : memref<16x32xf32, #tpu.memory_space<vmem>>, vector<16x32xf32>
    %c0_1 = arith.constant 0 : index
    %c0_2 = arith.constant 0 : index
    %1 = vector.load %arg2[%c0_1, %c0_2] : memref<1x32xf32, #tpu.memory_space<vmem>>, vector<1x32xf32>
    %c0_3 = arith.constant 0 : index
    %c0_4 = arith.constant 0 : index
    %2 = vector.load %arg3[%c0_3, %c0_4] : memref<1x32xf32, #tpu.memory_space<vmem>>, vector<1x32xf32>
    %cst = arith.constant dense<0.000000e+00> : vector<16xf32>
    %3 = vector.multi_reduction <add>, %0, %cst [1] : vector<16x32xf32> to vector<16xf32>
    %4 = vector.shape_cast %3 : vector<16xf32> to vector<16x1xf32>
    %cst_5 = arith.constant 3.200000e+01 : f32
    %5 = vector.broadcast %cst_5 : f32 to vector<16x1xf32>
    %6 = arith.divf %4, %5 : vector<16x1xf32>
    %7 = vector.broadcast %6 : vector<16x1xf32> to vector<16x32xf32>
    %8 = arith.subf %0, %7 : vector<16x32xf32>
    %9 = arith.mulf %8, %8 : vector<16x32xf32>
    %cst_6 = arith.constant dense<0.000000e+00> : vector<16xf32>
    %10 = vector.multi_reduction <add>, %9, %cst_6 [1] : vector<16x32xf32> to vector<16xf32>
    %11 = vector.shape_cast %10 : vector<16xf32> to vector<16x1xf32>
    %cst_7 = arith.constant 3.200000e+01 : f32
    %12 = vector.broadcast %cst_7 : f32 to vector<16x1xf32>
    %13 = arith.divf %11, %12 : vector<16x1xf32>
    %14 = vector.broadcast %6 : vector<16x1xf32> to vector<16x32xf32>
    %15 = arith.subf %0, %14 : vector<16x32xf32>
    %cst_8 = arith.constant 9.99999996E-13 : f32
    %16 = vector.broadcast %cst_8 : f32 to vector<16x1xf32>
    %17 = arith.addf %13, %16 : vector<16x1xf32>
    %18 = math.rsqrt %17 : vector<16x1xf32>
    %19 = vector.broadcast %18 : vector<16x1xf32> to vector<16x32xf32>
    %20 = arith.mulf %15, %19 : vector<16x32xf32>
    %21 = vector.broadcast %1 : vector<1x32xf32> to vector<16x32xf32>
    %22 = arith.mulf %20, %21 : vector<16x32xf32>
    %23 = vector.broadcast %2 : vector<1x32xf32> to vector<16x32xf32>
    %24 = arith.addf %22, %23 : vector<16x32xf32>
    %c0_9 = arith.constant 0 : index
    %c0_10 = arith.constant 0 : index
    %25 = vector.load %arg4[%c0_9, %c0_10] : memref<16x32xf32, #tpu.memory_space<vmem>>, vector<16x32xf32>
    tpu.vector_store %arg4[%c0_9, %c0_10], %24 {strides = array<i32>} : memref<16x32xf32, #tpu.memory_space<vmem>>, vector<16x32xf32>,
    return
  }
  func.func @transform_0(%arg0: i32) -> (i32, i32) {
    %c0_i32 = arith.constant 0 : i32
    %c0_i32_0 = arith.constant 0 : i32
    return %arg0, %c0_i32 : i32, i32
  }
  func.func @transform_1(%arg0: i32) -> (i32, i32) {
    %c0_i32 = arith.constant 0 : i32
    %c0_i32_0 = arith.constant 0 : i32
    %c0_i32_1 = arith.constant 0 : i32
    return %c0_i32, %c0_i32_0 : i32, i32
  }
  func.func @transform_2(%arg0: i32) -> (i32, i32) {
    %c0_i32 = arith.constant 0 : i32
    %c0_i32_0 = arith.constant 0 : i32
    %c0_i32_1 = arith.constant 0 : i32
    return %c0_i32, %c0_i32_0 : i32, i32
  }
  func.func @transform_3(%arg0: i32) -> (i32, i32) {
    %c0_i32 = arith.constant 0 : i32
    %c0_i32_0 = arith.constant 0 : i32
    return %arg0, %c0_i32 : i32, i32
  }
}

</mosaic_0001>

<bundles_post_ra>
// kernel: tpu_custom_call.1
= control target key start
LH: loop header
LB: loop body
LE: loop exit
PB: predicated region body
PF: predicated region fallthrough
CT: control target
= control target key end

     0   :  { %8 = vsyncpa [#allocation3], 0  ;;  %s198_s0 = inlined_call_operand.hbm [shape: f32[16,32], index: 0, kind: input, shape index: {}]   ;;  %s199_s1 = inlined_call_operand.vmem [shape: f32[1,32], index: 1, kind: input, shape index: {}]   ;;  %s200_s2 = inlined_call_operand.vmem [shape: f32[1,32], index: 2, kind: input, shape index: {}]   ;;  %s201_s3 = inlined_call_operand.hbm [shape: f32[16,32], index: 3, kind: output, shape index: {}]  }
   0x1   :  { %9 = vsyncpa [#allocation4], 0  ;;  %s150_s12 = smov [#allocation2]  }
   0x2   :  { %s15_s13 = sshll.u32 %s150_s12, 4  ;;  %s16_s13 = int_to_ptr.vmem [resolvable:$true] %s15_s13 }
   0x3   :  { %s114_s14 = scalar_lea.vmem %s16_s13, 256  ;;  %p119_p1 = scmp.lt.s32.totalorder %s16_s13, %s16_s13 }
   0x4   :  { %p115_p0 = scmp.ne.s32.totalorder %s16_s13, %s114_s14  ;;  %p120_p2 = scmp.lt.s32.totalorder %s114_s14, %s114_s14 }
   0x6   :  { %p121_p3 = por %p120_p2, %p119_p1 }
   0x8   :  { %p122_p4 = pnand %p121_p3, %p115_p0 }
   0xa   :  { %125 = shalt.err (!%p122_p4)
}
   0xb   :  { %s151_s15 = smov 128   ;;  %s152_s16 = smov 8  }
   0xc   :  { %21 = dma.hbm_to_vmem [thread:$0]  %s198_s0, 256, %s16_s13, [#allocation3], %s151_s15, %s151_s15, %s152_s16  }
   0xd   :  { %146 = dma.done.wait [#allocation3], 256  }
   0xe   :  { %147 = vsyncadd [#allocation3], 4294967040  ;;  %vm33_vm0 = vcmask 261120   ;;  %v29_v0 = vld [vmem:[#allocation2] sm:$0xff]  ;;  %v30_v1 = vld [vmem:[#allocation2 + $0x8] sm:$0xff]  ;;  %s153_s22 = smov [#allocation5]  }
   0xf   :  { %v34_v2 = vsel %vm33_vm0, %v29_v0, 0.0  ;;  %v37_v3 = vsel %vm33_vm0, %v30_v1, 0.0  ;;  %v96_v21 = vld [vmem:[%s199_s1] ss:$0 sm:$0xff]  ;;  %s84_s23 = sshll.u32 %s153_s22, 4  ;;  %s85_s23 = int_to_ptr.vmem [resolvable:$true] %s84_s23 }
  0x10   :  { %35 = vadd.xlane.f32.xlu0 %v34_v2  ;;  %v97_v23 = vld [vmem:[%s200_s2] ss:$0 sm:$0xff]  ;;  %s126_s24 = scalar_lea.vmem %s85_s23, 256  ;;  %p131_p6 = scmp.lt.s32.totalorder %s85_s23, %s85_s23 }
  0x11   :  { %p127_p5 = scmp.ne.s32.totalorder %s85_s23, %s126_s24  ;;  %p132_p7 = scmp.lt.s32.totalorder %s126_s24, %s126_s24 }
  0x13   :  { %p133_p8 = por %p132_p7, %p131_p6 }
  0x14   :  { %38 = vadd.xlane.f32.xlu0 %v37_v3 }
  0x15   :  { %p134_p9 = pnand %p133_p8, %p127_p5 }
  0x99   :  { %v36_v4 = vpop.xlane.xlu0 %35 }
  0x9a   :  { %v41_v5 = vmul.f32 0.03125, %v36_v4 }
  0x9c   :  { %v43_v6 = vsub.f32 %v29_v0, %v41_v5 }
  0x9d   :  { %v39_v7 = vpop.xlane.xlu0 %38 }
  0x9e   :  { %v42_v8 = vmul.f32 0.03125, %v39_v7  ;;  %v45_v9 = vmul.f32 %v43_v6, %v43_v6 }
  0xa0   :  { %v44_v10 = vsub.f32 %v30_v1, %v42_v8  ;;  %v47_v11 = vsel %vm33_vm0, %v45_v9, 0.0 }
  0xa1   :  { %48 = vadd.xlane.f32.xlu1 %v47_v11 }
  0xa2   :  { %v46_v12 = vmul.f32 %v44_v10, %v44_v10 }
  0xa4   :  { %v50_v13 = vsel %vm33_vm0, %v46_v12, 0.0 }
  0xa5   :  { %51 = vadd.xlane.f32.xlu1 %v50_v13 }
 0x12a   :  { %v49_v14 = vpop.xlane.xlu1 %48 }
 0x12b   :  { %v53_v15 = vmul.f32 0.03125, %v49_v14 }
 0x12d   :  { %v55_v16 = vadd.f32 1e-12, %v53_v15 }
 0x12e   :  { %v52_v17 = vpop.xlane.xlu1 %51 }
 0x12f   :  { %102 = vrsqrt.f32 %v55_v16  ;;  %v54_v18 = vmul.f32 0.03125, %v52_v17 }
 0x131   :  { %v56_v19 = vadd.f32 1e-12, %v54_v18 }
 0x133   :  { %104 = vrsqrt.f32 %v56_v19 }
 0x13c   :  { %v103_v20 = vpop.eup %102 }
 0x13d   :  { %v59_v22 = vmul.f32 %v103_v20, %v43_v6 }
 0x13f   :  { %v67_v24 = vmul.f32 %v96_v21, %v59_v22 }
 0x140   :  { %v105_v25 = vpop.eup %104 }
 0x141   :  { %v60_v26 = vmul.f32 %v105_v25, %v44_v10  ;;  %v75_v27 = vadd.f32 %v97_v23, %v67_v24 }
 0x143   :  { %v68_v28 = vmul.f32 %v96_v21, %v60_v26  ;;  %77 = vst.msk [vmem:[#allocation5] sm:$0xff] %vm33_vm0, %v75_v27 }
 0x145   :  { %v76_v29 = vadd.f32 %v97_v23, %v68_v28 }
 0x147   :  { %78 = vst.msk [vmem:[#allocation5 + $0x8] sm:$0xff] %vm33_vm0, %v76_v29 }
 0x148   :  { %137 = shalt.err (!%p134_p9)
}
 0x149   :  { %90 = dma.vmem_to_hbm [thread:$0]  %s85_s23, 256, %s201_s3, [#allocation4], %s151_s15, %s151_s15, %s152_s16  }
 0x14a   :  { %148 = dma.done.wait [#allocation4], 256  }
 0x14b   :  { %149 = vsyncadd [#allocation4], 4294967040 }
 0x14c   :  { %94 = vsyncpa [#allocation3], 1 }
 0x14d   :  { %95 = vsyncpa [#allocation4], 1 }

</bundles_post_ra>
